<compile_context>
chip_gen: v5e
topology: v5e:2x2
jax: 0.10.0
libtpu: 0.0.40
codegen_flags: <defaults>
</compile_context>

<pallas_src>
import math

import jax
import jax.numpy as jnp
from jax.experimental import pallas as pl
from jax.experimental.pallas import tpu as pltpu


# --------------------------------------------------------------------------
# Shape glue (matches torch .view semantics, incl. a single -1 wildcard).
# --------------------------------------------------------------------------
def _infer_target_shape(x, shape):
    b = x.shape[0]
    feat = math.prod(x.shape[1:]) if x.ndim > 1 else 1
    shape = tuple(int(s) for s in shape)
    if shape.count(-1) > 1:
        raise ValueError("only one -1 dimension is allowed")
    if -1 in shape:
        known = math.prod(s for s in shape if s != -1)
        if known <= 0 or feat % known != 0:
            raise ValueError(f"cannot view {x.shape} as ({b}, *{shape})")
        shape = tuple(feat // known if s == -1 else s for s in shape)
    target = math.prod(shape) if len(shape) > 0 else 1
    if target != feat:
        raise ValueError(
            f"cannot view {x.shape} as ({b}, *{shape}): {feat} != {target}")
    return shape


# --------------------------------------------------------------------------
# Module-equivalent forward: metadata-only reshape (review item #1 — the
# dominant optimization is to not move any bytes at all).
# --------------------------------------------------------------------------
def reshape_forward(x, shape):
    out_shape = _infer_target_shape(x, shape)
    return x.reshape((x.shape[0], *out_shape))


# --------------------------------------------------------------------------
# Physical-copy variant: tiled, lane-dense identity copy through VMEM.
# --------------------------------------------------------------------------
def _copy_kernel(x_ref, o_ref):
    # Identity copy — the only "compute" a reshape layer has.
    o_ref[...] = x_ref[...]


def _choose_2d_layout(total, itemsize, target_tile_bytes=2 << 20):
    """Pick (rows, cols, block_rows) for a lane/sublane-dense tiled copy."""
    lane_candidates = (8192, 4096, 2048, 1024, 512, 256, 128)
    cols = None
    # Prefer a lane width that also leaves >= 8 rows (sublane-dense vregs).
    for c in lane_candidates:
        if total % c == 0 and total // c >= 8:
            cols = c
            break
    if cols is None:
        for c in lane_candidates:
            if total % c == 0:
                cols = c
                break
    if cols is None:
        return None  # not lane-tileable without masked stores
    rows = total // cols

    # Tile rows: multiple of 8 sublanes, ~target_tile_bytes per tile.
    block_rows = max(8, (target_tile_bytes // (cols * itemsize)) // 8 * 8)
    block_rows = min(block_rows, rows)
    if rows < 8:
        block_rows = rows  # tiny input: single full-array block
    return rows, cols, block_rows


def reshape_forward_pallas(x, shape):
    """Same result as reshape_forward, but materializes a fresh copy on HBM
    via a tiled Pallas kernel (use only when a physical copy is required)."""
    b = x.shape[0]
    out_shape = _infer_target_shape(x, shape)
    total = math.prod(x.shape)
    itemsize = x.dtype.itemsize

    layout = _choose_2d_layout(total, itemsize)
    if layout is None:
        # Not cleanly lane-tileable; a copy would need masked partial stores.
        # The reshape itself is metadata-only, so just return it.
        return x.reshape((b, *out_shape))

    rows, cols, block_rows = layout
    x2d = x.reshape(rows, cols)  # metadata-only flatten to a lane-dense slab
    grid = (pl.cdiv(rows, block_rows),)

    out2d = pl.pallas_call(
        _copy_kernel,
        out_shape=jax.ShapeDtypeStruct((rows, cols), x.dtype),
        grid=grid,
        in_specs=[pl.BlockSpec((block_rows, cols), lambda i: (i, 0))],
        out_specs=pl.BlockSpec((block_rows, cols), lambda i: (i, 0)),
        input_output_aliases={0: 0},  # reuse input buffer when donatable
        compiler_params=pltpu.CompilerParams(
            dimension_semantics=("parallel",),  # independent tiles; v7x 2-TC split
        ),
        cost_estimate=pl.CostEstimate(
            flops=0,
            transcendentals=0,
            bytes_accessed=2 * total * itemsize,
        ),
    )(x2d)

    # Glue: metadata-only reshape of the copied slab to (B, *shape).
    return out2d.reshape((b, *out_shape))


if __name__ == "__main__":
    key = jax.random.PRNGKey(0)
    # Small input consistent with the module: NCHW tensor (2, 4, 16, 16),
    # reshaped to (batch, 16, 8, 8) — same number of elements per sample.
    x = jax.random.normal(key, (2, 4, 16, 16), dtype=jnp.float32)
    target_shape = [16, 8, 8]

    ref = x.reshape(x.shape[0], *target_shape)

    # Module-equivalent (metadata-only) path — the recommended production path.
    out_meta = reshape_forward(x, target_shape)

    # Pallas physical-copy path — runs the tiled copy kernel once.
    out = jax.block_until_ready(reshape_forward_pallas(x, target_shape))

    assert out.shape == (2, 16, 8, 8), out.shape
    assert out.dtype == x.dtype
    assert bool(jnp.array_equal(out, ref))
    assert out_meta.shape == (2, 16, 8, 8)
    assert bool(jnp.array_equal(out_meta, ref))

    print("KERNEL_OK")
</pallas_src>

<mosaic_0001>
module attributes {stable_mosaic.version = 11 : i64} {
  func.func @_copy_kernel(%arg0: i32, %arg1: memref<8x256xf32, #tpu.memory_space<vmem>>, %arg2: memref<8x256xf32, #tpu.memory_space<vmem>>) attributes {dimension_semantics = [#tpu.dimension_semantics<parallel>], iteration_bounds = array<i64: 1>, scalar_prefetch = 0 : i64, scratch_operands = 0 : i64, tpu.core_type = #tpu.core_type<tc>, window_params = [{transform_indices = @transform_0, window_bounds = array<i64: 8, 256>}, {transform_indices = @transform_1, window_bounds = array<i64: 8, 256>}]} {
    %c0 = arith.constant 0 : index
    %c0_0 = arith.constant 0 : index
    %0 = vector.load %arg1[%c0, %c0_0] : memref<8x256xf32, #tpu.memory_space<vmem>>, vector<8x256xf32>
    %c0_1 = arith.constant 0 : index
    %c0_2 = arith.constant 0 : index
    %1 = vector.load %arg2[%c0_1, %c0_2] : memref<8x256xf32, #tpu.memory_space<vmem>>, vector<8x256xf32>
    tpu.vector_store %arg2[%c0_1, %c0_2], %0 {strides = array<i32>} : memref<8x256xf32, #tpu.memory_space<vmem>>, vector<8x256xf32>,
    return
  }
  func.func @transform_0(%arg0: i32) -> (i32, i32) {
    %c0_i32 = arith.constant 0 : i32
    %c0_i32_0 = arith.constant 0 : i32
    return %arg0, %c0_i32 : i32, i32
  }
  func.func @transform_1(%arg0: i32) -> (i32, i32) {
    %c0_i32 = arith.constant 0 : i32
    %c0_i32_0 = arith.constant 0 : i32
    return %arg0, %c0_i32 : i32, i32
  }
}

</mosaic_0001>

<bundles_post_ra>
// kernel: tpu_custom_call.1
= control target key start
LH: loop header
LB: loop body
LE: loop exit
PB: predicated region body
PF: predicated region fallthrough
CT: control target
= control target key end

     0   :  { %6 = vsyncpa [#allocation3], 0  ;;  %s116_s0 = inlined_call_operand.hbm [shape: f32[8,256], index: 0, kind: input, shape index: {}, may-alias: {0,1}]   ;;  %s117_s1 = inlined_call_operand.hbm [shape: f32[8,256], index: 1, kind: output, shape index: {}, may-alias: {0,1}]  }
   0x1   :  { %7 = vsyncpa [#allocation4], 0  ;;  %s13_s8 = sshll.u32 %s116_s0, 4  ;;  %s98_s9 = smov [#allocation2]   ;;  %s14_s8 = int_to_ptr.hbm [resolvable:$true] %s13_s8 }
   0x2   :  { %s15_s10 = sshll.u32 %s98_s9, 4  ;;  %s16_s10 = int_to_ptr.vmem [resolvable:$true] %s15_s10 }
   0x3   :  { %18 = dma.hbm_to_vmem [thread:$0]  %s14_s8, 256, %s16_s10, [#allocation3]  }
   0x4   :  { %94 = dma.done.wait [#allocation3], 256  }
   0x5   :  { %95 = vsyncadd [#allocation3], 4294967040  ;;  %s99_s11 = smov [#allocation5]   ;;  %s34_s15 = sshll.u32 %s117_s1, 4  ;;  %v23_v0 = vld [vmem:[#allocation2] sm:$0xff]  ;;  %v24_v1 = vld [vmem:[#allocation2 + $0x8] sm:$0xff]  ;;  %s35_s15 = int_to_ptr.hbm [resolvable:$true] %s34_s15 }
   0x6   :  { %s32_s12 = sshll.u32 %s99_s11, 4  ;;  %25 = vst [vmem:[#allocation5] sm:$0xff] %v23_v0  ;;  %s33_s12 = int_to_ptr.vmem [resolvable:$true] %s32_s12 }
   0x7   :  { %26 = vst [vmem:[#allocation5 + $0x8] sm:$0xff] %v24_v1 }
   0x8   :  { %37 = dma.vmem_to_hbm [thread:$0]  %s33_s12, 256, %s35_s15, [#allocation4]  }
   0x9   :  { %96 = dma.done.wait [#allocation4], 256  }
   0xa   :  { %97 = vsyncadd [#allocation4], 4294967040 }
   0xb   :  { %42 = vsyncpa [#allocation3], 1 }
   0xc   :  { %43 = vsyncpa [#allocation4], 1 }

</bundles_post_ra>
